<compile_context>
chip_gen: v5e
topology: v5e:2x2
jax: 0.10.0
libtpu: 0.0.40
codegen_flags: <defaults>
</compile_context>

<pallas_src>
import math
from functools import partial

import jax
import jax.numpy as jnp
from jax.experimental import pallas as pl
from jax.experimental.pallas import tpu as pltpu


def _round_up(n: int, m: int) -> int:
    return ((n + m - 1) // m) * m


# ---------- shared-range-reduction sincos -----------------------------------
# theta = q*(pi/2) + r, |r| <= pi/4, reduced ONCE (Cody-Waite 3-term split),
# then both cephes sinf/cosf minimax polynomials are evaluated on r and a
# quadrant select recovers sin(theta), cos(theta).
_TWO_OVER_PI = 0.6366197723675814
_PIO2_1 = 1.5703125                   # pi/2 high bits (exact in f32)
_PIO2_2 = 4.837512969970703125e-4     # next bits (exact in f32)
_PIO2_3 = 7.54978995489188216e-8      # tail


def _sincos(theta):
    # Single shared range reduction (accurate for |theta| up to ~1e5 in f32).
    q = jnp.floor(theta * _TWO_OVER_PI + 0.5)
    r = ((theta - q * _PIO2_1) - q * _PIO2_2) - q * _PIO2_3
    r2 = r * r
    sp = r + r * r2 * (-1.6666654611e-1
                       + r2 * (8.3321608736e-3 + r2 * (-1.9515295891e-4)))
    cp = 1.0 - 0.5 * r2 + r2 * r2 * (4.166664568298827e-2
                                     + r2 * (-1.388731625493765e-3
                                             + r2 * 2.443315711809948e-5))
    qi = q.astype(jnp.int32) & 3
    swap = (qi == 1) | (qi == 3)
    s = jnp.where(swap, cp, sp)
    c = jnp.where(swap, sp, cp)
    s = jnp.where((qi == 2) | (qi == 3), -s, s)
    c = jnp.where((qi == 1) | (qi == 2), -c, c)
    return s, c


# ---------- kernel -----------------------------------------------------------
def _sinusoidal_kernel(x_ref, out_ref, *, neg_emb_scale: float):
    # x_ref:   (bt, 1)   f32 timesteps
    # out_ref: (bt, dim) output, laid out [ sin(theta) | cos(theta) ]
    half = out_ref.shape[-1] // 2
    k = jax.lax.broadcasted_iota(jnp.int32, (1, half), 1).astype(jnp.float32)
    freqs = jnp.exp(k * neg_emb_scale)            # (1, half), EUP exp
    theta = x_ref[...] * freqs                    # (bt, half), VPU broadcast
    s, c = _sincos(theta)                         # shared range reduction
    # In-register lane concat -> ONE full-block, lane-dense store.
    out_ref[...] = jnp.concatenate([s, c], axis=-1).astype(out_ref.dtype)


# ---------- wrapper ----------------------------------------------------------
def _choose_row_tile(B: int, dim: int, out_itemsize: int) -> int:
    # Keep double-buffered output (2*bt*dim*itemsize) + input (2*bt*4) under
    # ~12 MiB: safe for v5e's 16 MiB default scoped VMEM and leaves pipelining
    # headroom on v7x's 64 MiB physical VMEM.
    budget = 12 << 20
    per_row = 2 * (dim * out_itemsize + 4)
    vmem_rows = max(8, (budget // per_row) // 8 * 8)
    if B <= min(512, vmem_rows):
        return B            # single block; block dim == full array dim is legal
    # Large B: at least 2 grid steps so v7x's two TensorCores both get work.
    bt = min(vmem_rows, 1024, _round_up(pl.cdiv(B, 2), 8))
    return max(bt, 8)


def sinusoidal_pos_emb(x: jax.Array, dim: int, *, out_dtype=jnp.float32,
                       use_pallas: bool | None = None) -> jax.Array:
    """Pallas equivalent of SinusoidalPosEmb(dim)(x): (B,) -> (B, dim).

    out[:, :dim//2] = sin(x * freqs), out[:, dim//2:] = cos(x * freqs),
    matching torch.cat((emb.sin(), emb.cos()), dim=-1).
    """
    assert dim % 2 == 0, "dim must be even (module concatenates sin/cos halves)"
    assert dim >= 4, "dim == 2 divides by zero in the reference module"
    half = dim // 2
    neg_emb_scale = -(math.log(10000.0) / (half - 1))
    B = x.shape[0]
    out_itemsize = jnp.dtype(out_dtype).itemsize

    if use_pallas is None:
        # Tiny problems are pure launch overhead; let XLA fuse them instead.
        use_pallas = B * dim * out_itemsize >= (1 << 20)
    if not use_pallas:
        k = jnp.arange(half, dtype=jnp.float32)
        ang = x.astype(jnp.float32)[:, None] * jnp.exp(k * neg_emb_scale)[None, :]
        return jnp.concatenate([jnp.sin(ang), jnp.cos(ang)], -1).astype(out_dtype)

    bt = _choose_row_tile(B, dim, out_itemsize)
    grid = (pl.cdiv(B, bt),)          # ragged last block handled by Pallas
    x2d = x.astype(jnp.float32).reshape(-1, 1)      # (B, 1)
    kernel = partial(_sinusoidal_kernel, neg_emb_scale=neg_emb_scale)

    return pl.pallas_call(
        kernel,
        out_shape=jax.ShapeDtypeStruct((B, dim), out_dtype),
        grid=grid,
        in_specs=[pl.BlockSpec((bt, 1), lambda i: (i, 0))],
        out_specs=pl.BlockSpec((bt, dim), lambda i: (i, 0)),
        compiler_params=pltpu.CompilerParams(
            dimension_semantics=("parallel",),
        ),
    )(x2d)


def _reference(x: jax.Array, dim: int) -> jax.Array:
    half = dim // 2
    s = math.log(10000.0) / (half - 1)
    freqs = jnp.exp(jnp.arange(half, dtype=jnp.float32) * -s)
    ang = x.astype(jnp.float32)[:, None] * freqs[None, :]
    return jnp.concatenate([jnp.sin(ang), jnp.cos(ang)], axis=-1)


if __name__ == "__main__":
    key = jax.random.PRNGKey(0)
    B, dim = 8, 32
    # Timesteps (e.g. diffusion step indices) as floats in [0, 1000).
    x = jax.random.uniform(key, (B,), dtype=jnp.float32, minval=0.0, maxval=1000.0)

    out = jax.block_until_ready(sinusoidal_pos_emb(x, dim, use_pallas=True))
    ref = _reference(x, dim)

    assert out.shape == (B, dim), out.shape
    # In-kernel exp and the hand-rolled sincos differ from XLA's by a few ulps;
    # at timestep magnitudes ~1e3 the angle's f32 error amplifies to ~1e-4.
    err = float(jnp.max(jnp.abs(out - ref)))
    assert err < 5e-4, err
    print("KERNEL_OK")
</pallas_src>

<mosaic_0001>
module attributes {stable_mosaic.version = 11 : i64} {
  func.func @_sinusoidal_kernel(%arg0: i32, %arg1: memref<8x1xf32, #tpu.memory_space<vmem>>, %arg2: memref<8x32xf32, #tpu.memory_space<vmem>>) attributes {dimension_semantics = [#tpu.dimension_semantics<parallel>], iteration_bounds = array<i64: 1>, scalar_prefetch = 0 : i64, scratch_operands = 0 : i64, tpu.core_type = #tpu.core_type<tc>, window_params = [{transform_indices = @transform_0, window_bounds = array<i64: 8, 1>}, {transform_indices = @transform_1, window_bounds = array<i64: 8, 32>}]} {
    %0 = tpu.iota {dimensions = array<i32: 1>} : vector<1x16xi32>
    %1 = arith.sitofp %0 : vector<1x16xi32> to vector<1x16xf32>
    %cst = arith.constant -0.614022672 : f32
    %2 = vector.broadcast %cst : f32 to vector<1x16xf32>
    %3 = arith.mulf %1, %2 : vector<1x16xf32>
    %4 = math.exp %3 : vector<1x16xf32>
    %c0 = arith.constant 0 : index
    %c0_0 = arith.constant 0 : index
    %5 = vector.load %arg1[%c0, %c0_0] : memref<8x1xf32, #tpu.memory_space<vmem>>, vector<8x1xf32>
    %6 = vector.broadcast %5 : vector<8x1xf32> to vector<8x16xf32>
    %7 = vector.broadcast %4 : vector<1x16xf32> to vector<8x16xf32>
    %8 = arith.mulf %6, %7 : vector<8x16xf32>
    %cst_1 = arith.constant 0.636619746 : f32
    %9 = vector.broadcast %cst_1 : f32 to vector<8x16xf32>
    %10 = arith.mulf %8, %9 : vector<8x16xf32>
    %cst_2 = arith.constant 5.000000e-01 : f32
    %11 = vector.broadcast %cst_2 : f32 to vector<8x16xf32>
    %12 = arith.addf %10, %11 : vector<8x16xf32>
    %13 = math.floor %12 : vector<8x16xf32>
    %cst_3 = arith.constant 1.5703125 : f32
    %14 = vector.broadcast %cst_3 : f32 to vector<8x16xf32>
    %15 = arith.mulf %13, %14 : vector<8x16xf32>
    %16 = arith.subf %8, %15 : vector<8x16xf32>
    %cst_4 = arith.constant 4.83751297E-4 : f32
    %17 = vector.broadcast %cst_4 : f32 to vector<8x16xf32>
    %18 = arith.mulf %13, %17 : vector<8x16xf32>
    %19 = arith.subf %16, %18 : vector<8x16xf32>
    %cst_5 = arith.constant 7.549790e-08 : f32
    %20 = vector.broadcast %cst_5 : f32 to vector<8x16xf32>
    %21 = arith.mulf %13, %20 : vector<8x16xf32>
    %22 = arith.subf %19, %21 : vector<8x16xf32>
    %23 = arith.mulf %22, %22 : vector<8x16xf32>
    %24 = arith.mulf %22, %23 : vector<8x16xf32>
    %cst_6 = arith.constant -1.95152956E-4 : f32
    %25 = vector.broadcast %cst_6 : f32 to vector<8x16xf32>
    %26 = arith.mulf %23, %25 : vector<8x16xf32>
    %cst_7 = arith.constant 0.00833216123 : f32
    %27 = vector.broadcast %cst_7 : f32 to vector<8x16xf32>
    %28 = arith.addf %27, %26 : vector<8x16xf32>
    %29 = arith.mulf %23, %28 : vector<8x16xf32>
    %cst_8 = arith.constant -0.166666552 : f32
    %30 = vector.broadcast %cst_8 : f32 to vector<8x16xf32>
    %31 = arith.addf %30, %29 : vector<8x16xf32>
    %32 = arith.mulf %24, %31 : vector<8x16xf32>
    %33 = arith.addf %22, %32 : vector<8x16xf32>
    %cst_9 = arith.constant 5.000000e-01 : f32
    %34 = vector.broadcast %cst_9 : f32 to vector<8x16xf32>
    %35 = arith.mulf %34, %23 : vector<8x16xf32>
    %cst_10 = arith.constant 1.000000e+00 : f32
    %36 = vector.broadcast %cst_10 : f32 to vector<8x16xf32>
    %37 = arith.subf %36, %35 : vector<8x16xf32>
    %38 = arith.mulf %23, %23 : vector<8x16xf32>
    %cst_11 = arith.constant 2.44331568E-5 : f32
    %39 = vector.broadcast %cst_11 : f32 to vector<8x16xf32>
    %40 = arith.mulf %23, %39 : vector<8x16xf32>
    %cst_12 = arith.constant -0.00138873165 : f32
    %41 = vector.broadcast %cst_12 : f32 to vector<8x16xf32>
    %42 = arith.addf %41, %40 : vector<8x16xf32>
    %43 = arith.mulf %23, %42 : vector<8x16xf32>
    %cst_13 = arith.constant 0.0416666456 : f32
    %44 = vector.broadcast %cst_13 : f32 to vector<8x16xf32>
    %45 = arith.addf %44, %43 : vector<8x16xf32>
    %46 = arith.mulf %38, %45 : vector<8x16xf32>
    %47 = arith.addf %37, %46 : vector<8x16xf32>
    %48 = arith.fptosi %13 : vector<8x16xf32> to vector<8x16xi32>
    %c3_i32 = arith.constant 3 : i32
    %49 = vector.broadcast %c3_i32 : i32 to vector<8x16xi32>
    %50 = arith.andi %48, %49 : vector<8x16xi32>
    %c1_i32 = arith.constant 1 : i32
    %51 = vector.broadcast %c1_i32 : i32 to vector<8x16xi32>
    %52 = arith.cmpi eq, %50, %51 : vector<8x16xi32>
    %c3_i32_14 = arith.constant 3 : i32
    %53 = vector.broadcast %c3_i32_14 : i32 to vector<8x16xi32>
    %54 = arith.cmpi eq, %50, %53 : vector<8x16xi32>
    %55 = arith.ori %52, %54 : vector<8x16xi1>
    %56 = arith.select %55, %47, %33 : vector<8x16xi1>, vector<8x16xf32>
    %57 = arith.select %55, %33, %47 : vector<8x16xi1>, vector<8x16xf32>
    %c2_i32 = arith.constant 2 : i32
    %58 = vector.broadcast %c2_i32 : i32 to vector<8x16xi32>
    %59 = arith.cmpi eq, %50, %58 : vector<8x16xi32>
    %c3_i32_15 = arith.constant 3 : i32
    %60 = vector.broadcast %c3_i32_15 : i32 to vector<8x16xi32>
    %61 = arith.cmpi eq, %50, %60 : vector<8x16xi32>
    %62 = arith.ori %59, %61 : vector<8x16xi1>
    %cst_16 = arith.constant 0.000000e+00 : f32
    %63 = vector.broadcast %cst_16 : f32 to vector<8x16xf32>
    %64 = arith.subf %63, %56 : vector<8x16xf32>
    %65 = arith.select %62, %64, %56 : vector<8x16xi1>, vector<8x16xf32>
    %c1_i32_17 = arith.constant 1 : i32
    %66 = vector.broadcast %c1_i32_17 : i32 to vector<8x16xi32>
    %67 = arith.cmpi eq, %50, %66 : vector<8x16xi32>
    %c2_i32_18 = arith.constant 2 : i32
    %68 = vector.broadcast %c2_i32_18 : i32 to vector<8x16xi32>
    %69 = arith.cmpi eq, %50, %68 : vector<8x16xi32>
    %70 = arith.ori %67, %69 : vector<8x16xi1>
    %cst_19 = arith.constant 0.000000e+00 : f32
    %71 = vector.broadcast %cst_19 : f32 to vector<8x16xf32>
    %72 = arith.subf %71, %57 : vector<8x16xf32>
    %73 = arith.select %70, %72, %57 : vector<8x16xi1>, vector<8x16xf32>
    %74 = tpu.concatenate %65, %73 in 1 : vector<8x16xf32>, vector<8x16xf32> -> vector<8x32xf32>
    %c0_20 = arith.constant 0 : index
    %c0_21 = arith.constant 0 : index
    %75 = vector.load %arg2[%c0_20, %c0_21] : memref<8x32xf32, #tpu.memory_space<vmem>>, vector<8x32xf32>
    tpu.vector_store %arg2[%c0_20, %c0_21], %74 {strides = array<i32>} : memref<8x32xf32, #tpu.memory_space<vmem>>, vector<8x32xf32>,
    return
  }
  func.func @transform_0(%arg0: i32) -> (i32, i32) {
    %c0_i32 = arith.constant 0 : i32
    %c0_i32_0 = arith.constant 0 : i32
    return %arg0, %c0_i32 : i32, i32
  }
  func.func @transform_1(%arg0: i32) -> (i32, i32) {
    %c0_i32 = arith.constant 0 : i32
    %c0_i32_0 = arith.constant 0 : i32
    return %arg0, %c0_i32 : i32, i32
  }
}

</mosaic_0001>

<bundles_post_ra>
// kernel: tpu_custom_call.1
= control target key start
LH: loop header
LB: loop body
LE: loop exit
PB: predicated region body
PF: predicated region fallthrough
CT: control target
= control target key end

     0   :  { %s149_s0 = inlined_call_operand.vmem [shape: f32[8,1], index: 0, kind: input, shape index: {}]   ;;  %s150_s1 = inlined_call_operand.hbm [shape: f32[8,32], index: 1, kind: output, shape index: {}]  }
   0x1   :  { %v15_v0 = vld [vmem:[%s149_s0] sm:$0xff] }
   0x2   :  { %6 = vsyncpa [#allocation3], 0  ;;  %v120_v1 = vmov 0   ;;  %v9_v2 = vlaneseq  ;;  %s121_s0 = smov 16   ;;  %s122_s8 = smov [#allocation2]   ;;  %vm66_vm6 = vcmask 130048  }
   0x3   :  { %91 = vset.pattern.permute.xlu0 %v120_v1  ;;  %s75_s9 = sshll.u32 %s122_s8, 4  ;;  %s77_s12 = sshll.u32 %s150_s1, 4  ;;  %vm68_vm7 = vcmask 261120   ;;  %s76_s9 = int_to_ptr.vmem [resolvable:$true] %s75_s9  ;;  %s78_s12 = int_to_ptr.hbm [resolvable:$true] %s77_s12 }
   0x4   :  { %18 = vperm.xlu0 %91, %v15_v0   ;;  %v10_v3 = vand.u32 127, %v9_v2 }
   0x6   :  { %v11_v4 = vcvt.s32.f32 %v10_v3 }
   0x8   :  { %v12_v5 = vmul.f32 -0.6140227, %v11_v4 }
   0xa   :  { %v13_v6 = vmul.f32 1.442695, %v12_v5 }
   0xc   :  { %92 = vpow2.f32 %v13_v6 }
  0x12   :  { %v93_v7 = vpop.eup %92 }
  0x76   :  { %v19_v8 = vpop.permute.xlu0 %18 }
  0x77   :  { %v21_v9 = vmul.f32 %v93_v7, %v19_v8 }
  0x79   :  { %v22_v10 = vmul.f32 0.63661975, %v21_v9 }
  0x7b   :  { %v23_v11 = vadd.f32 0.5, %v22_v10 }
  0x7d   :  { %v24_v12 = vfloor.f32 %v23_v11 }
  0x7f   :  { %v25_v13 = vmul.f32 1.5703125, %v24_v12  ;;  %v87_v14 = vcvt.f32.s32 %v24_v12  ;;  %v27_v16 = vmul.f32 0.0004837513, %v24_v12  ;;  %v29_v19 = vmul.f32 7.54979e-08, %v24_v12 }
  0x81   :  { %v26_v15 = vsub.f32 %v21_v9, %v25_v13  ;;  %v49_v17 = vand.u32 3, %v87_v14 }
  0x83   :  { %v28_v18 = vsub.f32 %v26_v15, %v27_v16  ;;  %vm51_vm0 = vcmp.eq.s32.totalorder %v49_v17, 3  ;;  %vm55_vm1 = vcmp.eq.s32.totalorder %v49_v17, 2  ;;  %vm50_vm3 = vcmp.eq.s32.totalorder %v49_v17, 1 }
  0x84   :  { %vm138_vm2 = vmor %vm55_vm1, %vm51_vm0 }
  0x85   :  { %v30_v20 = vsub.f32 %v28_v18, %v29_v19  ;;  %vm52_vm4 = vmor %vm50_vm3, %vm51_vm0 }
  0x86   :  { %vm59_vm5 = vmor %vm50_vm3, %vm55_vm1 }
  0x87   :  { %v31_v22 = vmul.f32 %v30_v20, %v30_v20 }
  0x89   :  { %v33_v23 = vmul.f32 -0.00019515296, %v31_v22  ;;  %v42_v24 = vmul.f32 2.4433157e-05, %v31_v22  ;;  %v39_v28 = vmul.f32 0.5, %v31_v22  ;;  %v32_v30 = vmul.f32 %v31_v22, %v30_v20 }
  0x8a   :  { %v41_v32 = vmul.f32 %v31_v22, %v31_v22 }
  0x8b   :  { %v34_v25 = vadd.f32 0.008332161, %v33_v23  ;;  %v43_v26 = vadd.f32 -0.0013887316, %v42_v24  ;;  %v40_v35 = vsub.f32 1.0, %v39_v28 }
  0x8d   :  { %v35_v27 = vmul.f32 %v34_v25, %v31_v22  ;;  %v44_v29 = vmul.f32 %v43_v26, %v31_v22 }
  0x8f   :  { %v36_v31 = vadd.f32 -0.16666655, %v35_v27  ;;  %v45_v33 = vadd.f32 0.041666646, %v44_v29 }
  0x91   :  { %v37_v34 = vmul.f32 %v36_v31, %v32_v30  ;;  %v46_v36 = vmul.f32 %v45_v33, %v41_v32 }
  0x93   :  { %v38_v37 = vadd.f32 %v37_v34, %v30_v20  ;;  %v47_v38 = vadd.f32 %v46_v36, %v40_v35 }
  0x95   :  { %v54_v39 = vsel %vm52_vm4, %v38_v37, %v47_v38  ;;  %v53_v40 = vsel %vm52_vm4, %v47_v38, %v38_v37 }
  0x96   :  { %v60_v41 = vsub.f32 0.0, %v54_v39  ;;  %v57_v42 = vsub.f32 0.0, %v53_v40 }
  0x98   :  { %v61_v43 = vsel %vm59_vm5, %v60_v41, %v54_v39  ;;  %v58_v44 = vsel %vm138_vm2, %v57_v42, %v53_v40 }
  0x99   :  { %63 = vrot.lane.b32.xlu0 %v61_v43, %s121_s0 }
 0x10b   :  { %v64_v45 = vpop.permute.xlu0 %63 }
 0x10c   :  { %v67_v46 = vsel %vm66_vm6, %v58_v44, %v64_v45 }
 0x10d   :  { %69 = vst.msk [vmem:[#allocation2] sm:$0xff] %vm68_vm7, %v67_v46 }
 0x10e   :  { %80 = dma.vmem_to_hbm [thread:$0]  %s76_s9, 128, %s78_s12, [#allocation3]  }
 0x10f   :  { %118 = dma.done.wait [#allocation3], 128  }
 0x110   :  { %119 = vsyncadd [#allocation3], 4294967168 }
 0x111   :  { %85 = vsyncpa [#allocation3], 1 }

</bundles_post_ra>
